<compile_context>
chip_gen: v7x
topology: tpu7x:2x2x1
jax: 0.10.0
libtpu: 0.0.40
codegen_flags: <defaults>
</compile_context>

<pallas_src>
import math

import jax
import jax.numpy as jnp
from jax.experimental import pallas as pl
from jax.experimental.pallas import tpu as pltpu

LANE = 128      # lane width (last-dim alignment for the hidden size)
SUBLANE = 8     # sublane width (second-minor-dim alignment for batch tiles)


def _round_up(n, m):
    return ((n + m - 1) // m) * m


def _choose_tile(B):
    """Pick (batch tile, padded batch)."""
    b8 = _round_up(B, SUBLANE)
    if b8 <= 2 * SUBLANE:
        tb = b8  # one tiny tile; splitting further cannot help
    else:
        # >= 2 grid steps so v7x's two TensorCores both get work; cap the tile
        # at 1024 rows so single-TC v5e/v6e still amortize per-step overhead.
        tb = min(1024, _round_up(pl.cdiv(b8, 2), SUBLANE))
    b_pad = _round_up(b8, tb)
    return tb, b_pad


def softq_kernel(s_ref, a_ref, w1s_ref, w1a_ref, w2_ref, misc_ref, out_ref):
    """One batch tile.

    s_ref:   (tb, num_inputs)   f32   state tile
    a_ref:   (tb, num_actions)  f32   action tile
    w1s_ref: (num_inputs, Hp)   f32   layer-1 weight, state part
    w1a_ref: (num_actions, Hp)  f32   layer-1 weight, action part
    w2_ref:  (Hp, Hp)           f32   layer-2 weight
    misc_ref:(4, Hp)            f32   row0=b1, row1=b2, row2=w3 (as row), row3[0]=b3
    out_ref: (tb, 1)            f32   Q values
    """
    # linear1 + ReLU  (concat fused as a sum of two matmuls; f32 accumulate)
    h = (jnp.dot(s_ref[...], w1s_ref[...], preferred_element_type=jnp.float32)
         + jnp.dot(a_ref[...], w1a_ref[...], preferred_element_type=jnp.float32))
    h = jnp.maximum(h + misc_ref[0:1, :], 0.0)

    # linear2 + ReLU
    h = jnp.dot(h, w2_ref[...], preferred_element_type=jnp.float32)
    h = jnp.maximum(h + misc_ref[1:2, :], 0.0)

    # linear3 (single Q output): VPU multiply + lane reduction (XLU) gives a
    # (tb, 1) result directly — no (tb, 128) slab and no 128x-inflated store.
    q = jnp.sum(h * misc_ref[2:3, :], axis=1, keepdims=True) + misc_ref[3:4, 0:1]
    out_ref[...] = q


@jax.jit
def soft_q_forward(state, action, params):
    """state: [B, num_inputs], action: [B, num_actions] -> Q: [B, 1] (f32)."""
    w1s, w1a, w2, misc = params
    B, ni = state.shape
    na = action.shape[1]

    tb, b_pad = _choose_tile(B)
    if b_pad != B:
        # Only pads when B is not a tile multiple; padded rows are discarded.
        state = jnp.pad(state, ((0, b_pad - B), (0, 0)))
        action = jnp.pad(action, ((0, b_pad - B), (0, 0)))

    resident = lambda shape: pl.BlockSpec(shape, lambda i: (0, 0))  # noqa: E731

    out = pl.pallas_call(
        softq_kernel,
        out_shape=jax.ShapeDtypeStruct((b_pad, 1), jnp.float32),
        grid=(b_pad // tb,),
        in_specs=[
            pl.BlockSpec((tb, ni), lambda i: (i, 0)),   # state: batch-tiled
            pl.BlockSpec((tb, na), lambda i: (i, 0)),   # action: batch-tiled
            resident(w1s.shape),                        # weights / packed
            resident(w1a.shape),                        # biases stay resident
            resident(w2.shape),                         # in VMEM across the
            resident(misc.shape),                       # whole grid
        ],
        out_specs=pl.BlockSpec((tb, 1), lambda i: (i, 0)),
        compiler_params=pltpu.CompilerParams(
            dimension_semantics=("parallel",)),
    )(state, action, w1s, w1a, w2, misc)

    return out[:B]


def init_params(key, num_inputs, num_actions, hidden_size, init_w=3e-3):
    """Init mirroring the PyTorch module.

    Returns (kernel_params, ref_params):
      kernel_params: (w1s, w1a, w2p, misc) zero-padded / packed, f32
      ref_params:    (w1, b1, w2, b2, w3, b3) unpadded, for the pure-JAX check
    """
    ks = jax.random.split(key, 6)
    in1 = num_inputs + num_actions
    h_p = _round_up(hidden_size, LANE)

    bnd1 = 1.0 / math.sqrt(in1)
    bnd2 = 1.0 / math.sqrt(hidden_size)

    w1 = jax.random.uniform(ks[0], (in1, hidden_size), jnp.float32, -bnd1, bnd1)
    b1 = jax.random.uniform(ks[1], (hidden_size,), jnp.float32, -bnd1, bnd1)
    w2 = jax.random.uniform(ks[2], (hidden_size, hidden_size), jnp.float32, -bnd2, bnd2)
    b2 = jax.random.uniform(ks[3], (hidden_size,), jnp.float32, -bnd2, bnd2)
    w3 = jax.random.uniform(ks[4], (hidden_size, 1), jnp.float32, -init_w, init_w)
    b3 = jax.random.uniform(ks[5], (1,), jnp.float32, -init_w, init_w)

    # Zero padding keeps the math exact: padded weight rows/cols and padded
    # bias entries are zero, so padded hidden columns stay 0 through ReLU and
    # contribute nothing to the Q head.
    w1s = jnp.zeros((num_inputs, h_p), jnp.float32).at[:, :hidden_size].set(w1[:num_inputs])
    w1a = jnp.zeros((num_actions, h_p), jnp.float32).at[:, :hidden_size].set(w1[num_inputs:])
    w2p = jnp.zeros((h_p, h_p), jnp.float32).at[:hidden_size, :hidden_size].set(w2)

    misc = jnp.zeros((4, h_p), jnp.float32)
    misc = misc.at[0, :hidden_size].set(b1)        # bias 1
    misc = misc.at[1, :hidden_size].set(b2)        # bias 2
    misc = misc.at[2, :hidden_size].set(w3[:, 0])  # layer-3 weight as a row
    misc = misc.at[3, 0].set(b3[0])                # layer-3 bias

    return (w1s, w1a, w2p, misc), (w1, b1, w2, b2, w3, b3)


if __name__ == "__main__":
    # Small shapes consistent with the module (TORCS-like state + action vec).
    B, NUM_INPUTS, NUM_ACTIONS, HIDDEN = 8, 24, 8, 32

    key = jax.random.PRNGKey(0)
    k_state, k_action, k_params = jax.random.split(key, 3)

    state = jax.random.normal(k_state, (B, NUM_INPUTS), jnp.float32)
    action = jax.random.uniform(k_action, (B, NUM_ACTIONS), jnp.float32, -1.0, 1.0)
    params, ref_params = init_params(k_params, NUM_INPUTS, NUM_ACTIONS, HIDDEN)

    q = jax.block_until_ready(soft_q_forward(state, action, params))
    assert q.shape == (B, 1)

    # Pure-JAX reference of the PyTorch forward (all f32).
    w1, b1, w2, b2, w3, b3 = ref_params
    x = jnp.concatenate([state, action], axis=1)
    h = jax.nn.relu(x @ w1 + b1)
    h = jax.nn.relu(h @ w2 + b2)
    q_ref = h @ w3 + b3

    assert jnp.allclose(q, q_ref, atol=2e-3, rtol=2e-3), "mismatch vs reference"
    print("KERNEL_OK")
</pallas_src>

<mosaic_0001>
module attributes {stable_mosaic.version = 11 : i64} {
  func.func @softq_kernel(%arg0: i32, %arg1: memref<8x24xf32, #tpu.memory_space<vmem>>, %arg2: memref<8x8xf32, #tpu.memory_space<vmem>>, %arg3: memref<24x128xf32, #tpu.memory_space<vmem>>, %arg4: memref<8x128xf32, #tpu.memory_space<vmem>>, %arg5: memref<128x128xf32, #tpu.memory_space<vmem>>, %arg6: memref<4x128xf32, #tpu.memory_space<vmem>>, %arg7: memref<8x1xf32, #tpu.memory_space<vmem>>) attributes {dimension_semantics = [#tpu.dimension_semantics<parallel>], iteration_bounds = array<i64: 1>, scalar_prefetch = 0 : i64, scratch_operands = 0 : i64, tpu.core_type = #tpu.core_type<tc>, window_params = [{transform_indices = @transform_0, window_bounds = array<i64: 8, 24>}, {transform_indices = @transform_1, window_bounds = array<i64: 8, 8>}, {pipeline_mode = #tpu.pipeline_mode<synchronous>, transform_indices = @transform_2, window_bounds = array<i64: 24, 128>}, {pipeline_mode = #tpu.pipeline_mode<synchronous>, transform_indices = @transform_3, window_bounds = array<i64: 8, 128>}, {pipeline_mode = #tpu.pipeline_mode<synchronous>, transform_indices = @transform_4, window_bounds = array<i64: 128, 128>}, {pipeline_mode = #tpu.pipeline_mode<synchronous>, transform_indices = @transform_5, window_bounds = array<i64: 4, 128>}, {transform_indices = @transform_6, window_bounds = array<i64: 8, 1>}]} {
    %c0 = arith.constant 0 : index
    %c0_0 = arith.constant 0 : index
    %0 = vector.load %arg1[%c0, %c0_0] : memref<8x24xf32, #tpu.memory_space<vmem>>, vector<8x24xf32>
    %c0_1 = arith.constant 0 : index
    %c0_2 = arith.constant 0 : index
    %1 = vector.load %arg3[%c0_1, %c0_2] : memref<24x128xf32, #tpu.memory_space<vmem>>, vector<24x128xf32>
    %cst = arith.constant dense<0.000000e+00> : vector<8x128xf32>
    %2 = tpu.matmul %0, %1, %cst {dimension_numbers = #tpu.dot_dimension_numbers<[1], [0], [0], [1], [0, 0, 1, 1], [], []>} : vector<8x24xf32>, vector<24x128xf32>, vector<8x128xf32> -> vector<8x128xf32>
    %c0_3 = arith.constant 0 : index
    %c0_4 = arith.constant 0 : index
    %3 = vector.load %arg2[%c0_3, %c0_4] : memref<8x8xf32, #tpu.memory_space<vmem>>, vector<8x8xf32>
    %c0_5 = arith.constant 0 : index
    %c0_6 = arith.constant 0 : index
    %4 = vector.load %arg4[%c0_5, %c0_6] : memref<8x128xf32, #tpu.memory_space<vmem>>, vector<8x128xf32>
    %cst_7 = arith.constant dense<0.000000e+00> : vector<8x128xf32>
    %5 = tpu.matmul %3, %4, %cst_7 {dimension_numbers = #tpu.dot_dimension_numbers<[1], [0], [0], [1], [0, 0, 1, 1], [], []>} : vector<8x8xf32>, vector<8x128xf32>, vector<8x128xf32> -> vector<8x128xf32>
    %6 = arith.addf %2, %5 : vector<8x128xf32>
    %c0_8 = arith.constant 0 : index
    %c0_9 = arith.constant 0 : index
    %7 = vector.load %arg6[%c0_8, %c0_9] : memref<4x128xf32, #tpu.memory_space<vmem>>, vector<1x128xf32>
    %8 = vector.broadcast %7 : vector<1x128xf32> to vector<8x128xf32>
    %9 = arith.addf %6, %8 : vector<8x128xf32>
    %cst_10 = arith.constant 0.000000e+00 : f32
    %10 = vector.broadcast %cst_10 : f32 to vector<8x128xf32>
    %11 = arith.maximumf %9, %10 : vector<8x128xf32>
    %c0_11 = arith.constant 0 : index
    %c0_12 = arith.constant 0 : index
    %12 = vector.load %arg5[%c0_11, %c0_12] : memref<128x128xf32, #tpu.memory_space<vmem>>, vector<128x128xf32>
    %cst_13 = arith.constant dense<0.000000e+00> : vector<8x128xf32>
    %13 = tpu.matmul %11, %12, %cst_13 {dimension_numbers = #tpu.dot_dimension_numbers<[1], [0], [0], [1], [0, 0, 1, 1], [], []>} : vector<8x128xf32>, vector<128x128xf32>, vector<8x128xf32> -> vector<8x128xf32>
    %c1 = arith.constant 1 : index
    %c0_14 = arith.constant 0 : index
    %14 = vector.load %arg6[%c1, %c0_14] : memref<4x128xf32, #tpu.memory_space<vmem>>, vector<1x128xf32>
    %15 = vector.broadcast %14 : vector<1x128xf32> to vector<8x128xf32>
    %16 = arith.addf %13, %15 : vector<8x128xf32>
    %cst_15 = arith.constant 0.000000e+00 : f32
    %17 = vector.broadcast %cst_15 : f32 to vector<8x128xf32>
    %18 = arith.maximumf %16, %17 : vector<8x128xf32>
    %c2 = arith.constant 2 : index
    %c0_16 = arith.constant 0 : index
    %19 = vector.load %arg6[%c2, %c0_16] : memref<4x128xf32, #tpu.memory_space<vmem>>, vector<1x128xf32>
    %20 = vector.broadcast %19 : vector<1x128xf32> to vector<8x128xf32>
    %21 = arith.mulf %18, %20 : vector<8x128xf32>
    %cst_17 = arith.constant dense<0.000000e+00> : vector<8xf32>
    %22 = vector.multi_reduction <add>, %21, %cst_17 [1] : vector<8x128xf32> to vector<8xf32>
    %23 = vector.shape_cast %22 : vector<8xf32> to vector<8x1xf32>
    %c3 = arith.constant 3 : index
    %c0_18 = arith.constant 0 : index
    %24 = vector.load %arg6[%c3, %c0_18] : memref<4x128xf32, #tpu.memory_space<vmem>>, vector<1x1xf32>
    %25 = vector.broadcast %24 : vector<1x1xf32> to vector<8x1xf32>
    %26 = arith.addf %23, %25 : vector<8x1xf32>
    %c0_19 = arith.constant 0 : index
    %c0_20 = arith.constant 0 : index
    %27 = vector.load %arg7[%c0_19, %c0_20] : memref<8x1xf32, #tpu.memory_space<vmem>>, vector<8x1xf32>
    tpu.vector_store %arg7[%c0_19, %c0_20], %26 {strides = array<i32>} : memref<8x1xf32, #tpu.memory_space<vmem>>, vector<8x1xf32>,
    return
  }
  func.func @transform_0(%arg0: i32) -> (i32, i32) {
    %c0_i32 = arith.constant 0 : i32
    %c0_i32_0 = arith.constant 0 : i32
    return %arg0, %c0_i32 : i32, i32
  }
  func.func @transform_1(%arg0: i32) -> (i32, i32) {
    %c0_i32 = arith.constant 0 : i32
    %c0_i32_0 = arith.constant 0 : i32
    return %arg0, %c0_i32 : i32, i32
  }
  func.func @transform_2(%arg0: i32) -> (i32, i32) {
    %c0_i32 = arith.constant 0 : i32
    %c0_i32_0 = arith.constant 0 : i32
    %c0_i32_1 = arith.constant 0 : i32
    return %c0_i32, %c0_i32_0 : i32, i32
  }
  func.func @transform_3(%arg0: i32) -> (i32, i32) {
    %c0_i32 = arith.constant 0 : i32
    %c0_i32_0 = arith.constant 0 : i32
    %c0_i32_1 = arith.constant 0 : i32
    return %c0_i32, %c0_i32_0 : i32, i32
  }
  func.func @transform_4(%arg0: i32) -> (i32, i32) {
    %c0_i32 = arith.constant 0 : i32
    %c0_i32_0 = arith.constant 0 : i32
    %c0_i32_1 = arith.constant 0 : i32
    return %c0_i32, %c0_i32_0 : i32, i32
  }
  func.func @transform_5(%arg0: i32) -> (i32, i32) {
    %c0_i32 = arith.constant 0 : i32
    %c0_i32_0 = arith.constant 0 : i32
    %c0_i32_1 = arith.constant 0 : i32
    return %c0_i32, %c0_i32_0 : i32, i32
  }
  func.func @transform_6(%arg0: i32) -> (i32, i32) {
    %c0_i32 = arith.constant 0 : i32
    %c0_i32_0 = arith.constant 0 : i32
    return %arg0, %c0_i32 : i32, i32
  }
}

</mosaic_0001>

<bundles_post_ra>
// kernel: soft_q_forward.1
= control target key start
LH: loop header
LB: loop body
LE: loop exit
PB: predicated region body
PF: predicated region fallthrough
CT: control target
= control target key end

     0   :  { %11 = vsyncpa [#allocation3], 0  ;;  %s671_s0 = inlined_call_operand.hbm [shape: f32[8,24], index: 0, kind: input, shape index: {}]   ;;  %s672_s1 = inlined_call_operand.hbm [shape: f32[8,8], index: 1, kind: input, shape index: {}]   ;;  %s673_s2 = inlined_call_operand.hbm [shape: f32[24,128], index: 2, kind: input, shape index: {}]   ;;  %s674_s3 = inlined_call_operand.vmem [shape: f32[8,128], index: 3, kind: input, shape index: {}]   ;;  %s675_s4 = inlined_call_operand.hbm [shape: f32[128,128], index: 4, kind: input, shape index: {}]   ;;  %s676_s5 = inlined_call_operand.vmem [shape: f32[4,128], index: 5, kind: input, shape index: {}]   ;;  %s677_s6 = inlined_call_operand.vmem [shape: f32[8,1], index: 6, kind: output, shape index: {}]  }
   0x1   :  { %12 = vsyncpa [#allocation5], 0 }
   0x2   :  { %13 = vsyncpa [#allocation8], 0  ;;  %s558_s21 = smov [#allocation4]   ;;  %s559_s23 = smov [#allocation2]  }
   0x3   :  { %s30_s22 = sshll.u32 %s558_s21, 4  ;;  %s20_s24 = sshll.u32 %s559_s23, 4  ;;  %s31_s22 = int_to_ptr.vmem [resolvable:$true] %s30_s22  ;;  %s21_s24 = int_to_ptr.vmem [resolvable:$true] %s20_s24 }
   0x4   :  { %s464_s27 = scalar_lea.hbm %s672_s1, 128 }
   0x5   :  { %p465_p0 = scmp.ne.s32.totalorder %s672_s1, %s464_s27  ;;  %p468_p1 = scmp.lt.u32.totalorder %s464_s27, %s672_s1 }
   0x7   :  { %p470_p2 = pnand %p468_p1, %p465_p0 }
   0x9   :  { %473 = shalt.err (!%p470_p2)
}
   0xa   :  { %s474_s8 = scalar_lea.vmem %s31_s22, 128  ;;  %p479_p4 = scmp.lt.s32.totalorder %s31_s22, %s31_s22 }
   0xb   :  { %p475_p3 = scmp.ne.s32.totalorder %s31_s22, %s474_s8  ;;  %p480_p5 = scmp.lt.s32.totalorder %s474_s8, %s474_s8 }
   0xd   :  { %p481_p6 = por %p480_p5, %p479_p4 }
   0xf   :  { %p482_p7 = pnand %p481_p6, %p475_p3 }
  0x11   :  { %485 = shalt.err (!%p482_p7)
}
  0x12   :  { %33 = dma.hbm_to_vmem [thread:$0]  %s672_s1, 128, %s31_s22, [#allocation5]  }
  0x13   :  { %s486_s13 = scalar_lea.hbm %s671_s0, 128 }
  0x14   :  { %p487_p8 = scmp.ne.s32.totalorder %s671_s0, %s486_s13  ;;  %p490_p9 = scmp.lt.u32.totalorder %s486_s13, %s671_s0 }
  0x16   :  { %p492_p10 = pnand %p490_p9, %p487_p8 }
  0x18   :  { %495 = shalt.err (!%p492_p10)
}
  0x19   :  { %s496_s18 = scalar_lea.vmem %s21_s24, 128  ;;  %p501_p12 = scmp.lt.s32.totalorder %s21_s24, %s21_s24 }
  0x1a   :  { %p497_p11 = scmp.ne.s32.totalorder %s21_s24, %s496_s18  ;;  %p502_p13 = scmp.lt.s32.totalorder %s496_s18, %s496_s18 }
  0x1c   :  { %p503_p0 = por %p502_p13, %p501_p12 }
  0x1e   :  { %p504_p1 = pnand %p503_p0, %p497_p11 }
  0x20   :  { %507 = shalt.err (!%p504_p1)
}
  0x21   :  { %23 = dma.hbm_to_vmem [thread:$0]  %s671_s0, 128, %s21_s24, [#allocation3]  }
  0x22   :  { %s560_s20 = smov [#allocation6]   ;;  %s508_s25 = scalar_lea.hbm %s673_s2, 384 }
  0x23   :  { %s39_s21 = sshll.u32 %s560_s20, 4  ;;  %p509_p2 = scmp.ne.s32.totalorder %s673_s2, %s508_s25  ;;  %s40_s21 = int_to_ptr.vmem [resolvable:$true] %s39_s21 }
  0x24   :  { %p512_p3 = scmp.lt.u32.totalorder %s508_s25, %s673_s2 }
  0x26   :  { %p514_p4 = pnand %p512_p3, %p509_p2 }
  0x28   :  { %517 = shalt.err (!%p514_p4)
}
  0x29   :  { %s518_s30 = scalar_lea.vmem %s40_s21, 384  ;;  %p523_p6 = scmp.lt.s32.totalorder %s40_s21, %s40_s21 }
  0x2a   :  { %p519_p5 = scmp.ne.s32.totalorder %s40_s21, %s518_s30  ;;  %p524_p7 = scmp.lt.s32.totalorder %s518_s30, %s518_s30 }
  0x2c   :  { %p525_p8 = por %p524_p7, %p523_p6 }
  0x2e   :  { %p526_p9 = pnand %p525_p8, %p519_p5 }
  0x30   :  { %529 = shalt.err (!%p526_p9)
}
  0x31   :  { %s561_s0 = smov 128   ;;  %s562_s24 = smov 8  }
  0x32   :  { %45 = dma.hbm_to_vmem [thread:$0]  %s673_s2, 384, %s40_s21, [#allocation5], %s561_s0, %s561_s0, %s562_s24  }
  0x33   :  { %s563_s9 = smov [#allocation7]   ;;  %s530_s13 = scalar_lea.hbm %s675_s4, 2048 }
  0x34   :  { %s53_s10 = sshll.u32 %s563_s9, 4  ;;  %p531_p10 = scmp.ne.s32.totalorder %s675_s4, %s530_s13  ;;  %s54_s10 = int_to_ptr.vmem [resolvable:$true] %s53_s10 }
  0x35   :  { %p534_p11 = scmp.lt.u32.totalorder %s530_s13, %s675_s4 }
  0x37   :  { %p536_p12 = pnand %p534_p11, %p531_p10 }
  0x39   :  { %539 = shalt.err (!%p536_p12)
}
  0x3a   :  { %s540_s18 = scalar_lea.vmem %s54_s10, 2048  ;;  %p545_p0 = scmp.lt.s32.totalorder %s54_s10, %s54_s10 }
  0x3b   :  { %p541_p13 = scmp.ne.s32.totalorder %s54_s10, %s540_s18  ;;  %p546_p1 = scmp.lt.s32.totalorder %s540_s18, %s540_s18 }
  0x3d   :  { %p547_p2 = por %p546_p1, %p545_p0 }
  0x3f   :  { %p548_p3 = pnand %p547_p2, %p541_p13 }
  0x41   :  { %551 = shalt.err (!%p548_p3)
}
  0x42   :  { %59 = dma.hbm_to_vmem [thread:$0]  %s675_s4, 2048, %s54_s10, [#allocation8], %s561_s0, %s561_s0, %s562_s24  }
  0x43   :  { %552 = dma.done.wait [#allocation3], 128  }
  0x44   :  { %553 = vsyncadd [#allocation3], 4294967168 }
  0x45   :  { %554 = dma.done.wait [#allocation5], 512  }
  0x46   :  { %555 = vsyncadd [#allocation5], 4294966784 }
  0x47   :  { %556 = dma.done.wait [#allocation8], 2048  }
  0x48   :  { %557 = vsyncadd [#allocation8], 4294965248  ;;  %v564_v0 = vmov 0.0   ;;  %vm565_vm0 = vmmov 0   ;;  %v566_v1 = vmov 0.0|0.0   ;;  %vm80_vm1 = vcmask 64512  }
  0x49   :  { %379 = vmatprep.subr.mxu1 %v564_v0  ;;  %381 = vmatprep.mubr.msk.f32.mxu1 %vm565_vm0, %v564_v0  ;;  %v79_v2 = vld [vmem:[%s674_s3] sm:$0xff]  ;;  %v78_v3 = vld [vmem:[#allocation4] sm:$0xff]  ;;  %v75_v4 = vld [vmem:[#allocation6] sm:$0xff]  ;;  %vm154_vm2 = vcmask 195584   ;;  %vm341_vm3 = vcmask 7168  }
  0x4a   :  { %431 = vmatprep.subr.bf16.mxu0 %v566_v1  ;;  %425 = vmatprep.mubr.msk.f32.mxu0 %vm565_vm0, %v564_v0  ;;  %v76_v5 = vld [vmem:[#allocation6 + $0x8] sm:$0xff]  ;;  %v235_v7 = vld [vmem:[#allocation7] sm:$0xff]  ;;  %v236_v8 = vld [vmem:[#allocation7 + $0x8] sm:$0xff] }
  0x4b   :  { %380 = vmatpush3.msra.mxu1 %v79_v2  ;;  %v429_v6 = vpack.c.bf16 %v76_v5, %v75_v4  ;;  %v237_v9 = vld [vmem:[#allocation7 + $0x10] sm:$0xff]  ;;  %v432_v10 = vpack.c.bf16 %v236_v8, %v235_v7  ;;  %v238_v11 = vld [vmem:[#allocation7 + $0x18] sm:$0xff]  ;;  %v239_v15 = vld [vmem:[#allocation7 + $0x20] sm:$0xff] }
  0x4c   :  { %382 = vmatmul.mubr.msk.f32.vlgmr.msra.gmra.mrb[0].mxu1 %vm80_vm1, %v78_v3  ;;  %428 = vmatprep.subr.bf16.mxu1 %v566_v1  ;;  %v77_v12 = vld [vmem:[#allocation6 + $0x10] sm:$0xff]  ;;  %v435_v13 = vpack.c.bf16 %v238_v11, %v237_v9  ;;  %v240_v16 = vld [vmem:[#allocation7 + $0x28] sm:$0xff]  ;;  %v241_v18 = vld [vmem:[#allocation7 + $0x30] sm:$0xff] }
  0x4d   :  { %390 = vmatprep.mubr.msk.f32.mxu1 %vm565_vm0, %v564_v0  ;;  %430 = vmatpush3.bf16.msra.mxu1 %v429_v6  ;;  %v74_v14 = vld [vmem:[#allocation2] sm:$0xff]  ;;  %v438_v17 = vpack.c.bf16 %v240_v16, %v239_v15  ;;  %v243_v21 = vld [vmem:[#allocation7 + $0x40] sm:$0xff]  ;;  %v244_v22 = vld [vmem:[#allocation7 + $0x48] sm:$0xff] }
  0x4e   :  { %388 = vmatprep.subr.mxu1 %v564_v0  ;;  %433 = vmatpush3.bf16.msra.mxu0 %v432_v10  ;;  %v242_v19 = vld [vmem:[#allocation7 + $0x38] sm:$0xff]  ;;  %v444_v23 = vpack.c.bf16 %v244_v22, %v243_v21  ;;  %v245_v24 = vld [vmem:[#allocation7 + $0x50] sm:$0xff]  ;;  %v247_v27 = vld [vmem:[#allocation7 + $0x60] sm:$0xff] }
  0x4f   :  { %434 = vmatprep.subr.bf16.mxu0 %v566_v1  ;;  %v441_v20 = vpack.c.bf16 %v242_v19, %v241_v18  ;;  %v246_v25 = vld [vmem:[#allocation7 + $0x58] sm:$0xff]  ;;  %v248_v28 = vld [vmem:[#allocation7 + $0x68] sm:$0xff]  ;;  %v249_v30 = vld [vmem:[#allocation7 + $0x70] sm:$0xff] }
  0x50   :  { %v447_v26 = vpack.c.bf16 %v246_v25, %v245_v24  ;;  %v450_v29 = vpack.c.bf16 %v248_v28, %v247_v27  ;;  %v250_v31 = vld [vmem:[#allocation7 + $0x78] sm:$0xff] }
  0x51   :  { %389 = vmatpush3.msra.mxu1 %v77_v12  ;;  %v453_v32 = vpack.c.bf16 %v250_v31, %v249_v30  ;;  %v352_v36 = vld [vmem:[%s676_s5] ss:$0 sm:$0xff]  ;;  %v353_v41 = vld [vmem:[%s676_s5 + $0x1] ss:$0 sm:$0xff]  ;;  %v354_v45 = vld [vmem:[%s676_s5 + $0x2] ss:$0 sm:$0xff] }
  0x52   :  { %391 = vmatmul.mubr.msk.f32.vlgmr.msra.gmra.mrb[2].mxu1 %vm154_vm2, %v74_v14  ;;  %436 = vmatpush3.bf16.msra.mxu0 %v435_v13  ;;  %v355_v48 = vld [vmem:[%s676_s5 + $0x3] ss:$0 sm:$0xff] }
  0x53   :  { %437 = vmatprep.subr.bf16.mxu0 %v566_v1 }
  0x56   :  { %439 = vmatpush3.bf16.msra.mxu0 %v438_v17 }
  0x57   :  { %440 = vmatprep.subr.bf16.mxu0 %v566_v1 }
  0x5a   :  { %442 = vmatpush3.bf16.msra.mxu0 %v441_v20 }
  0x5b   :  { %443 = vmatprep.subr.bf16.mxu0 %v566_v1 }
  0x5e   :  { %445 = vmatpush3.bf16.msra.mxu0 %v444_v23 }
  0x5f   :  { %446 = vmatprep.subr.bf16.mxu0 %v566_v1 }
  0x62   :  { %448 = vmatpush3.bf16.msra.mxu0 %v447_v26 }
  0x63   :  { %449 = vmatprep.subr.bf16.mxu0 %v566_v1 }
  0x66   :  { %451 = vmatpush3.bf16.msra.mxu0 %v450_v29 }
  0x67   :  { %452 = vmatprep.subr.bf16.mxu0 %v566_v1 }
  0x6a   :  { %454 = vmatpush3.bf16.msra.mxu0 %v453_v32 }
 0x11f   :  { %v150_v33 = vpop.f32.mrb[0].mxu1 }
 0x120   :  { %v383_v34 = vpop.f32.mrb[1].mxu1 }
 0x125   :  { %v224_v35 = vpop.f32.mrb[2].mxu1 }
 0x126   :  { %v225_v37 = vadd.f32 %v224_v35, %v150_v33  ;;  %v392_v38 = vpop.f32.mrb[3].mxu1 }
 0x128   :  { %v233_v39 = vadd.f32 %v352_v36, %v225_v37 }
 0x12a   :  { %v234_v40 = vmax.f32 %v233_v39, 0.0 }
 0x12c   :  { %426 = vmatmul.mubr.f32.vlgmr.msra.gmra.mrb[0].mxu0 %v234_v40 }
 0x1ff   :  { %v322_v42 = vpop.f32.mrb[0].mxu0 }
 0x200   :  { %v323_v43 = vadd.f32 %v353_v41, %v322_v42  ;;  %v427_v44 = vpop.f32.mrb[1].mxu0 }
 0x202   :  { %v326_v46 = vmax.f32 %v323_v43, 0.0 }
 0x204   :  { %v332_v47 = vmul.f32 %v354_v45, %v326_v46 }
 0x206   :  { %333 = vadd.xlane.f32.xlu0 %v332_v47 }
 0x293   :  { %v334_v49 = vpop.xlane.xlu0 %333 }
 0x294   :  { %v340_v50 = vadd.f32 %v355_v48, %v334_v49 }
 0x296   :  { %342 = vst.msk [vmem:[%s677_s6] sm:$0xff] %vm341_vm3, %v340_v50 }
 0x297   :  { %347 = vsyncpa [#allocation3], 1 }
 0x298   :  { %348 = vsyncpa [#allocation5], 1 }
 0x299   :  { %349 = vsyncpa [#allocation8], 1 }

</bundles_post_ra>
